<compile_context>
chip_gen: v7x
topology: tpu7x:2x2x1
jax: 0.10.0
libtpu: 0.0.40
codegen_flags: <defaults>
</compile_context>

<pallas_src>
import jax
import jax.numpy as jnp
from jax.experimental import pallas as pl
from jax.experimental.pallas import tpu as pltpu


def _embedding_gather_kernel(ids_ref, table_hbm, out_ref, row_buf, sem):
    # ids_ref:   (T,)    int32 in SMEM (scalar prefetch) -- all token ids
    # table_hbm: (V, H)  float in HBM  (no automatic DMA)
    # out_ref:   (TT, H) float in VMEM (pipelined output tile)
    # row_buf:   (TT, H) float VMEM scratch gather destination
    # sem:       single DMA semaphore shared by all row copies of this tile
    tile = pl.program_id(0)
    tt = out_ref.shape[0]
    num_rows = table_hbm.shape[0]
    base = tile * tt

    # Issue all row DMAs for this tile before waiting on any, so they overlap.
    @pl.loop(0, tt)
    def _start(t):
        row = ids_ref[base + t]
        # Defensive clamp: PyTorch nn.Embedding errors on OOB ids; an
        # unclamped OOB index here would be an out-of-bounds HBM DMA.
        row = jnp.minimum(jnp.maximum(row, 0), num_rows - 1)
        pltpu.make_async_copy(
            table_hbm.at[pl.ds(row, 1), :],
            row_buf.at[pl.ds(t, 1), :],
            sem,
        ).start()

    # All copies have identical byte counts and signal the same semaphore, so
    # waiting `tt` times with a matching descriptor drains them all.
    @pl.loop(0, tt)
    def _wait(t):
        pltpu.make_async_copy(
            table_hbm.at[pl.ds(0, 1), :],
            row_buf.at[pl.ds(t, 1), :],
            sem,
        ).wait()

    out_ref[...] = row_buf[...]


def word_embeddings_forward(input_ids, embedding_table, *, token_tile=128):
    """input_ids: (B, S) int, embedding_table: (V, H) -> (B, S, H)."""
    b, s = input_ids.shape
    v, h = embedding_table.shape
    t = b * s

    token_tile = min(token_tile, t)
    assert t % token_tile == 0, "token count must be divisible by token_tile"
    assert token_tile % 8 == 0 or token_tile == t, (
        "token_tile must be a multiple of 8 (sublane tiling)")

    ids_flat = input_ids.reshape(t).astype(jnp.int32)

    out = pl.pallas_call(
        _embedding_gather_kernel,
        out_shape=jax.ShapeDtypeStruct((t, h), embedding_table.dtype),
        grid_spec=pltpu.PrefetchScalarGridSpec(
            num_scalar_prefetch=1,                      # ids -> SMEM
            grid=(t // token_tile,),
            in_specs=[
                pl.BlockSpec(memory_space=pl.ANY),      # table stays in HBM
            ],
            out_specs=pl.BlockSpec((token_tile, h), lambda i, ids: (i, 0)),
            scratch_shapes=[
                pltpu.VMEM((token_tile, h), embedding_table.dtype),
                pltpu.SemaphoreType.DMA(()),
            ],
        ),
        compiler_params=pltpu.CompilerParams(
            # Token tiles are independent -> shard across both TCs on v7x.
            dimension_semantics=("parallel",),
        ),
    )(ids_flat, embedding_table)

    return out.reshape(b, s, h)


if __name__ == "__main__":
    # Small, module-consistent shapes: batch=2, seq=8, vocab=256, hidden=128.
    B, S, V, H = 2, 8, 256, 128

    key = jax.random.PRNGKey(0)
    k_ids, k_emb = jax.random.split(key)

    input_ids = jax.random.randint(k_ids, (B, S), 0, V, dtype=jnp.int32)
    # Deterministic synthetic embedding weights (stand-in for checkpoint).
    embedding_table = jax.random.normal(k_emb, (V, H), dtype=jnp.float32) * 0.02

    # token_tile=8 -> 2 grid steps at this toy size, exercising the
    # multi-step data-dependent gather path; use the default 128 at real sizes.
    out = word_embeddings_forward(input_ids, embedding_table, token_tile=8)
    out = jax.block_until_ready(out)

    # Reference check: plain gather (DMA copy is bit-exact).
    ref = jnp.take(embedding_table, input_ids, axis=0)
    assert out.shape == (B, S, H)
    assert jnp.allclose(out, ref), "mismatch vs. reference gather"

    print("KERNEL_OK")
</pallas_src>

<mosaic_0001>
module attributes {stable_mosaic.version = 11 : i64} {
  func.func @_embedding_gather_kernel(%arg0: i32, %arg1: memref<16xi32, #tpu.memory_space<smem>>, %arg2: memref<256x128xf32, #tpu.memory_space<any>>, %arg3: memref<8x128xf32, #tpu.memory_space<vmem>>, %arg4: memref<8x128xf32, #tpu.memory_space<vmem>>, %arg5: memref<!tpu.dma_semaphore, #tpu.memory_space<semaphore_mem>>) attributes {dimension_semantics = [#tpu.dimension_semantics<parallel>], iteration_bounds = array<i64: 2>, scalar_prefetch = 1 : i64, scratch_operands = 2 : i64, tpu.core_type = #tpu.core_type<tc>, window_params = [{}, {transform_indices = @transform_1, window_bounds = array<i64: 8, 128>}]} {
    %c8_i32 = arith.constant 8 : i32
    %0 = arith.muli %arg0, %c8_i32 : i32
    %c0_i32 = arith.constant 0 : i32
    %c8_i32_0 = arith.constant 8 : i32
    %1 = arith.addi %c0_i32, %c8_i32_0 : i32
    %c1_i32 = arith.constant 1 : i32
    scf.for %arg6 = %c0_i32 to %1 step %c1_i32  : i32 {
      %c1_i32_9 = arith.constant 1 : i32
      %5 = arith.muli %arg6, %c1_i32_9 : i32
      %c0_i32_10 = arith.constant 0 : i32
      %6 = arith.addi %c0_i32_10, %5 : i32
      %7 = arith.addi %0, %6 : i32
      %8 = arith.index_cast %7 : i32 to index
      %9 = memref.load %arg1[%8] : memref<16xi32, #tpu.memory_space<smem>>
      %c0_i32_11 = arith.constant 0 : i32
      %10 = arith.maxsi %9, %c0_i32_11 : i32
      %c255_i32 = arith.constant 255 : i32
      %11 = arith.minsi %10, %c255_i32 : i32
      %c0_i32_12 = arith.constant 0 : i32
      %12 = tpu.memref_slice %arg2[%11, %c0_i32_12] : memref<256x128xf32, #tpu.memory_space<any>> -> memref<1x128xf32, #tpu.memory_space<any>>
      %c0_i32_13 = arith.constant 0 : i32
      %13 = tpu.memref_slice %arg4[%6, %c0_i32_13] : memref<8x128xf32, #tpu.memory_space<vmem>> -> memref<1x128xf32, #tpu.memory_space<vmem>>
      tpu.enqueue_dma source(%12 : memref<1x128xf32, #tpu.memory_space<any>>) target(%13 : memref<1x128xf32, #tpu.memory_space<vmem>>) target_semaphore(%arg5 : memref<!tpu.dma_semaphore, #tpu.memory_space<semaphore_mem>>)
    }
    %c8_i32_1 = arith.constant 8 : i32
    %c0_i32_2 = arith.constant 0 : i32
    %c8_i32_3 = arith.constant 8 : i32
    %2 = arith.addi %c0_i32_2, %c8_i32_3 : i32
    %c1_i32_4 = arith.constant 1 : i32
    scf.for %arg6 = %c0_i32_2 to %2 step %c1_i32_4  : i32 {
      %c1_i32_9 = arith.constant 1 : i32
      %5 = arith.muli %arg6, %c1_i32_9 : i32
      %c0_i32_10 = arith.constant 0 : i32
      %6 = arith.addi %c0_i32_10, %5 : i32
      %c0_i32_11 = arith.constant 0 : i32
      %c0_i32_12 = arith.constant 0 : i32
      %7 = tpu.memref_slice %arg2[%c0_i32_11, %c0_i32_12] : memref<256x128xf32, #tpu.memory_space<any>> -> memref<1x128xf32, #tpu.memory_space<any>>
      %c0_i32_13 = arith.constant 0 : i32
      %8 = tpu.memref_slice %arg4[%6, %c0_i32_13] : memref<8x128xf32, #tpu.memory_space<vmem>> -> memref<1x128xf32, #tpu.memory_space<vmem>>
      tpu.wait_dma2 semaphore(%arg5 : memref<!tpu.dma_semaphore, #tpu.memory_space<semaphore_mem>>) src(%7 : memref<1x128xf32, #tpu.memory_space<any>>) dst(%8 : memref<1x128xf32, #tpu.memory_space<vmem>>)
    }
    %c8_i32_5 = arith.constant 8 : i32
    %c0 = arith.constant 0 : index
    %c0_6 = arith.constant 0 : index
    %3 = vector.load %arg4[%c0, %c0_6] : memref<8x128xf32, #tpu.memory_space<vmem>>, vector<8x128xf32>
    %c0_7 = arith.constant 0 : index
    %c0_8 = arith.constant 0 : index
    %4 = vector.load %arg3[%c0_7, %c0_8] : memref<8x128xf32, #tpu.memory_space<vmem>>, vector<8x128xf32>
    tpu.vector_store %arg3[%c0_7, %c0_8], %3 {strides = array<i32>} : memref<8x128xf32, #tpu.memory_space<vmem>>, vector<8x128xf32>,
    return
  }
  func.func @transform_1(%arg0: i32, %arg1: memref<16xi32, #tpu.memory_space<smem>>) -> (i32, i32) {
    %c0_i32 = arith.constant 0 : i32
    %c0_i32_0 = arith.constant 0 : i32
    return %arg0, %c0_i32 : i32, i32
  }
}

</mosaic_0001>

<bundles_post_ra>
// kernel: tpu_custom_call.1
= control target key start
LH: loop header
LB: loop body
LE: loop exit
PB: predicated region body
PF: predicated region fallthrough
CT: control target
= control target key end

     0   :  { %s480_s0 = inlined_call_operand.hbm [shape: s32[16], index: 0, kind: input, shape index: {}]   ;;  %s481_s1 = inlined_call_operand.hbm [shape: f32[256,128], index: 1, kind: input, shape index: {}]   ;;  %s482_s2 = inlined_call_operand.hbm [shape: f32[16,128], index: 2, kind: output, shape index: {}]  }
   0x1   :  { %s232_s11 = scalar_lea.hbm %s480_s0, 16 }
   0x2   :  { %p233_p0 = scmp.ne.s32.totalorder %s480_s0, %s232_s11  ;;  %p236_p1 = scmp.lt.u32.totalorder %s232_s11, %s480_s0 }
   0x4   :  { %p238_p2 = pnand %p236_p1, %p233_p0 }
   0x6   :  { %241 = shalt.err (!%p238_p2)  }
   0x7   :  { %s342_s16 = smov [#allocation5]  }
   0x8   :  { %8 = dma.hbm_to_smem %s480_s0, 16, %s342_s16, [#allocation4] }
   0x9   :  { %314 = dma.done.wait [#allocation4], 16 }
   0xa   :  { %315 = vsyncadd [#allocation4], 4294967280 }
   0xb   :  { %10 = sfence }
   0xc   :  { %11 = vsyncpa [#allocation7], 0 }
   0xd   :  { %13 = vsyncpa [#allocation7 + $0x1], 0  ;;  %s372_s19 = smov 0   ;;  %s374_s20 = smov 0  }
   0xe   :  { %s376_s21 = smov 0  }
   0xf LB: > { %s166_s0 = sadd.s32 4294967295, %s332_s21   ;;  %s389_s22 = sadd.s32 1, %s332_s21   ;;  %s332_s21 = sphi %s376_s21, %s488_s21   ;;  %s328_s20 = sphi %s374_s20, %s487_s20   ;;  %s324_s19 = sphi %s372_s19, %s486_s19  }
  0x10   : > { %s22_s23 = ssub.s32 %s332_s21, %s389_s22  ;;  %s25_s24 = sadd.s32 1, %s328_s20 }
  0x11   : > { %p23_p3 = scmp.eq.s32.totalorder %s22_s23, 0  ;;  %p167_p4 = scmp.ne.s32.totalorder %s22_s23, 0 }
  0x12   : > { %p29_p5 = scmp.eq.s32.totalorder %s332_s21, 1  ;;  %p34_p6 = scmp.ne.s32.totalorder %s328_s20, %s324_s19 }
  0x13   : > { %s398_s25 = scalar_select %p23_p3, %s328_s20, %s25_s24  }
  0x14   : > { %p400_p7 = por %p167_p4, %p29_p5  ;;  %p35_p8 = scmp.eq.s32.totalorder %s166_s0, 1 }
  0x15   : > { %p168_p10 = scmp.ge.s32.totalorder %s332_s21, 2 }
  0x16   : > { %p404_p9 = por %p35_p8, %p34_p6  ;;  %s49_s28 = sand.u32 (!%p168_p10), 1, %s328_s20  }
  0x17   : > { %44 = sbr.rel (%p168_p10) target bundleno = 102 (0x66), region = 12  ;;  %s170_s29 = sshll.u32 (!%p168_p10), %s332_s21, 3 }
  0x18   : > { %s484_s27 = scalar_select %p404_p9, 1, 0 }
  0x19   : > { %s413_s30 = sshll.u32 (!%p168_p10), %s49_s28, 3  ;;  %s416_s4 = smov (!%p168_p10), 0  }
  0x1a   : > { %s51_s3 = scalar_lea.vmem (!%p168_p10), [#allocation6], %s413_s30 }
  0x1e LB: >> { %s59_s5 = sadd.s32 %s336_s4, %s170_s29  ;;  %s67_s7 = scalar_lea.vmem [#allocation2], %s336_s4  ;;  %s336_s4 = sphi %s416_s4, %s58_s4  }
  0x1f   : >> { %s60_s6 = sld [smem:[#allocation5 + %s59_s5]]  ;;  %s75_s8 = sshll.u32 %s67_s7, 4  ;;  %s76_s8 = int_to_ptr.vmem [resolvable:$true] %s75_s8 }
  0x20   : >> { %s244_s16 = scalar_lea.hbm %s481_s1, 4096 }
  0x25   : >> { %p61_p11 = scmp.gt.s32.totalorder %s60_s6, 0  ;;  %p171_p12 = scmp.lt.s32.totalorder %s60_s6, 255 }
  0x27   : >> { %s490_s6 = smov (!%p61_p11, %s60_s6), 0 }
  0x28   : >> { %s492_s6 = smov (!%p171_p12, %s490_s6), 255 }
  0x29   : >> { %s176_s9 = sshll.u32 %s492_s6, 4 }
  0x2a   : >> { %s66_s12 = scalar_lea.hbm %s481_s1, %s176_s9 }
  0x2b   : >> { %s242_s13 = scalar_lea.hbm %s66_s12, 16  ;;  %p245_p0 = scmp.lt.u32.totalorder %s66_s12, %s481_s1 }
  0x2c   : >> { %p243_p13 = scmp.ne.s32.totalorder %s66_s12, %s242_s13  ;;  %p246_p1 = scmp.lt.u32.totalorder %s244_s16, %s242_s13 }
  0x2d   : >> { %p248_p3 = scmp.lt.u32.totalorder %s242_s13, %s66_s12 }
  0x2e   : >> { %p247_p2 = por %p246_p1, %p245_p0 }
  0x30   : >> { %p249_p4 = por %p248_p3, %p247_p2 }
  0x32   : >> { %p250_p5 = pnand %p249_p4, %p243_p13 }
  0x34   : >> { %253 = shalt.err (!%p250_p5)  }
  0x35   : >> { %s254_s0 = scalar_lea.vmem %s76_s8, 16  ;;  %s343_s23 = smov [#allocation2]  }
  0x36   : >> { %p255_p6 = scmp.ne.s32.totalorder %s76_s8, %s254_s0  ;;  %s256_s24 = sshll.u32 %s343_s23, 4  ;;  %s257_s24 = int_to_ptr.vmem [resolvable:$false] %s256_s24 }
  0x37   : >> { %s258_s5 = scalar_lea.vmem %s257_s24, 128  ;;  %p259_p8 = scmp.lt.s32.totalorder %s76_s8, %s257_s24 }
  0x38   : >> { %p260_p10 = scmp.lt.s32.totalorder %s258_s5, %s254_s0 }
  0x3a   : >> { %p261_p11 = por %p260_p10, %p259_p8 }
  0x3c   : >> { %p262_p12 = pnand %p261_p11, %p255_p6 }
  0x3e   : >> { %265 = shalt.err (!%p262_p12)  }
  0x3f   : >> { %78 = dma.hbm_to_vmem [thread:$0]  %s66_s12, 16, %s76_s8, [#allocation3] }
  0x40   : >> { %s58_s4 = sadd.s32 1, %s336_s4  }
  0x41   : >> { %p55_p9 = scmp.ge.s32.totalorder %s58_s4, 8  }
  0x42   : > { %s338_s6 = smov (%p55_p9), 0  }
  0x43   : > { %57 = sbr.rel (!%p55_p9) target bundleno = 30 (0x1e), region = 64 }
  0x4a LB: >> { %316 = dma.done.wait [#allocation3], 16  ;;  %s340_s6 = sphi %s338_s6, %s84_s6  }
  0x4b   : >> { %317 = vsyncadd [#allocation3], 4294967280  ;;  %s84_s6 = sadd.s32 1, %s340_s6  }
  0x4c   : >> { %p81_p13 = scmp.ge.s32.totalorder %s84_s6, 8  }
  0x4d   : > { %v88_v0 = vld [vmem:[#allocation2] sm:$0xff] (%p81_p13)  ;;  %s178_s7 = sshll.u32 (%p81_p13), %s332_s21, 7  ;;  %s104_s9 = sshll.u32 (%p81_p13), %s51_s3, 4  ;;  %s105_s9 = int_to_ptr.vmem [resolvable:$true] %s104_s9 }
  0x4e   : > { %83 = sbr.rel (!%p81_p13) target bundleno = 74 (0x4a), region = 75  ;;  %89 = vst [vmem:[%s51_s3] sm:$0xff] (%p81_p13), %v88_v0  ;;  %s443_s8 = scalar_lea.hbm (%p81_p13), %s482_s2, %s178_s7 }
  0x4f   : > { %s91_s10 = scalar_lea.sflag (%p81_p13), [#allocation7], %s49_s28  ;;  %s266_s11 = scalar_lea.vmem (%p81_p13), %s105_s9, 128 }
  0x50   : > { %p267_p9 = scmp.ne.s32.totalorder (%p81_p13), %s105_s9, %s266_s11  ;;  %s344_s12 = smov (%p81_p13), [#allocation6]  }
  0x51   : > { %s270_s13 = sshll.u32 (%p81_p13), %s344_s12, 4  ;;  %s271_s13 = int_to_ptr.vmem [resolvable:$false] %s270_s13 }
  0x52   : > { %p268_p0 = pnand (%p81_p13), %p267_p9, %p400_p7  ;;  %s272_s14 = scalar_lea.vmem (%p81_p13), %s271_s13, 256 }
  0x53   : > { %p273_p2 = scmp.lt.s32.totalorder (%p81_p13), %s105_s9, %s271_s13  ;;  %p274_p3 = scmp.lt.s32.totalorder (%p81_p13), %s272_s14, %s266_s11 }
  0x54   : > { %p269_p1 = pneg (%p81_p13), %p268_p0 }
  0x55   : > { %p275_p4 = por %p274_p3, %p273_p2 }
  0x57   : > { %p276_p5 = pnand %p275_p4, %p269_p1 }
  0x59   : > { %279 = shalt.err (!%p276_p5)
}
  0x5a   : > { %s280_s28 = scalar_lea.hbm %s443_s8, 128  ;;  %s284_s15 = scalar_lea.hbm %s482_s2, 256 }
  0x5b   : > { %p281_p6 = scmp.ne.s32.totalorder %s443_s8, %s280_s28  ;;  %p285_p11 = scmp.lt.u32.totalorder %s443_s8, %s482_s2 }
  0x5c   : > { %p286_p12 = scmp.lt.u32.totalorder %s284_s15, %s280_s28  ;;  %p288_p9 = scmp.lt.u32.totalorder %s280_s28, %s443_s8 }
  0x5d   : > { %p282_p8 = pnand %p281_p6, %p400_p7 }
  0x5e   : > { %p287_p13 = por %p286_p12, %p285_p11 }
  0x5f   : > { %p283_p10 = pneg %p282_p8 }
  0x60   : > { %p289_p0 = por %p288_p9, %p287_p13 }
  0x62   : > { %p290_p1 = pnand %p289_p0, %p283_p10 }
  0x64   : > { %293 = shalt.err (!%p290_p1)
}
  0x65   : > { %184 = dma.vmem_to_hbm [thread:$0]  (%p400_p7), %s105_s9, 128, %s443_s8, %s91_s10  }
  0x66 PF: > { %p190_p2 = scmp.ge.s32.totalorder %s332_s21, 1  ;;  %s116_s18 = sand.u32 1, %s324_s19  }
  0x67   : > { %p485_p3 = scmp.ne.s32.totalorder %s484_s27, 0  ;;  %s117_s0 = scalar_lea.sflag [#allocation7], %s116_s18 }
  0x69   : > { %p187_p4 = pnand %p190_p2, %p485_p3 }
  0x6b   : > { %319 = dma.done.wait (!%p187_p4), %s117_s0, 128  }
  0x6c   : > { %321 = vsyncadd (!%p187_p4), %s117_s0, 4294967168  ;;  %p16_p5 = scmp.ge.s32.totalorder %s389_s22, 3   ;;  %s486_s19 = smov %s328_s20 }
  0x6d   : > { %s487_s20 = smov %s398_s25  ;;  %s488_s21 = smov %s389_s22 }
  0x6e   :  { %18 = sbr.rel (!%p16_p5) target bundleno = 15 (0xf), region = 86 }
  0x75   :  { %122 = vsyncpa [#allocation7], 1 }
  0x76   :  { %124 = vsyncpa [#allocation7 + $0x1], 1 }
  0x77   :  { %125 = vsyncmov [#allocation3] }
  0x7a   :  { %s126_s21 = vpop.sfrf %125 }
  0x7b   :  { %p181_p7 = scmp.ne.s32.totalorder %s126_s21, 0 }
  0x7d   :  { %130 = shalt.err (%p181_p7)  }

</bundles_post_ra>
